<compile_context>
chip_gen: v7x
topology: tpu7x:2x2x1
jax: 0.10.0
libtpu: 0.0.40
codegen_flags: <defaults>
</compile_context>

<pallas_src>
import functools

import jax
import jax.numpy as jnp
from jax.experimental import pallas as pl
from jax.experimental.pallas import tpu as pltpu

H1 = 256           # fc1 width
H2 = 128           # fc2 width
OUT_PAD = 128      # lane-dense padded fc3 width used for COMPUTE inside the kernel
TB_DEFAULT = 2048  # batch-tile rows per grid step (multiple of 8)
NEG_BIG = -1e30    # padded-logit bias (f32): exp(NEG_BIG - m) underflows to exactly 0


def _round_up(n, m):
    return ((n + m - 1) // m) * m


def _bf16_elementwise_ok():
    """bf16 VPU/EUP exists on v6e and v7x; older gens (<= v5) run elementwise in f32."""
    try:
        kind = jax.devices()[0].device_kind.lower()
    except Exception:
        return False
    return ("v6" in kind) or ("v7" in kind)


def _sigmoid(pre_f32, use_bf16):
    """sigmoid(pre) = 1 / (1 + exp(-pre)).

    f32 path: divide via pl.reciprocal(approx=True) -> EUP slot, not VALU.
    bf16 path (v6e/v7x): whole elementwise phase in bf16 (halves vreg traffic);
    the result feeds the next bf16 MXU matmul with no extra cast.
    """
    if not use_bf16:
        return pl.reciprocal(1.0 + jnp.exp(-pre_f32), approx=True)
    p = pre_f32.astype(jnp.bfloat16)
    return 1.0 / (1.0 + jnp.exp(-p))


def _pnet_kernel(x_ref, w1_ref, b1_ref, w2_ref, b2_ref, w3_ref, b3_ref, out_ref,
                 *, use_bf16_act):
    # fc1 + sigmoid: bf16 MXU matmul, f32 accumulation.
    x = x_ref[...].astype(jnp.bfloat16)        # no-op if the caller passes bf16 x
    pre1 = jnp.dot(x, w1_ref[...], preferred_element_type=jnp.float32) + b1_ref[...]
    h1 = _sigmoid(pre1, use_bf16_act)

    # fc2 + sigmoid
    pre2 = jnp.dot(h1.astype(jnp.bfloat16), w2_ref[...],
                   preferred_element_type=jnp.float32) + b2_ref[...]
    h2 = _sigmoid(pre2, use_bf16_act)

    # fc3 (lane-dense, 128 padded columns) + numerically-stable softmax.
    # NOTE: bias/logits must stay f32 so the -1e30 padded-bias entries exp() to
    # exactly 0 (do not switch b3 / logits to bf16 without revisiting this).
    logits = jnp.dot(h2.astype(jnp.bfloat16), w3_ref[...],
                     preferred_element_type=jnp.float32) + b3_ref[...]
    m = jnp.max(logits, axis=-1, keepdims=True)
    e = jnp.exp(logits - m)                       # padded lanes -> exactly 0
    denom = jnp.sum(e, axis=-1, keepdims=True)
    probs = e * pl.reciprocal(denom, approx=True)  # divide on the EUP slot

    # Narrow HBM writeback: store only the first out_ref.shape[-1] lanes
    # (action_dim rounded up to 8) instead of all 128 padded lanes.
    out_ref[...] = probs[:, : out_ref.shape[-1]].astype(out_ref.dtype)


def p_net_forward(x, params, *, tb=TB_DEFAULT, use_bf16_act=None):
    """x: (batch, state_dim) f32 (or bf16). params from init_params."""
    w1, b1 = params["w1"], params["b1"]
    w2, b2 = params["w2"], params["b2"]
    w3, b3 = params["w3"], params["b3"]
    action_dim = params["action_dim"]
    batch, state_dim = x.shape

    if use_bf16_act is None:
        use_bf16_act = _bf16_elementwise_ok()

    # HBM output width: action_dim rounded up to a sublane-friendly 8 lanes.
    out_store = min(OUT_PAD, _round_up(max(action_dim, 1), 8))

    # Pad the batch only to a multiple of 8 rows; the grid uses cdiv and Pallas
    # handles the ragged final block (padded / overhang rows are discarded).
    padded_batch = _round_up(batch, 8)
    if padded_batch != batch:
        x = jnp.pad(x, ((0, padded_batch - batch), (0, 0)))

    # Batch tile: as large as possible to amortize per-step grid overhead, but
    # capped so the grid has >= 2 steps whenever there is enough work so that
    # ("parallel",) can shard across both v7x TensorCores.
    tb = min(tb, padded_batch)
    tb = min(tb, _round_up(pl.cdiv(padded_batch, 2), 8))
    grid = (pl.cdiv(padded_batch, tb),)

    resident = lambda i: (0, 0)  # weights/biases stay VMEM-resident across steps

    kernel = functools.partial(_pnet_kernel, use_bf16_act=use_bf16_act)

    out = pl.pallas_call(
        kernel,
        out_shape=jax.ShapeDtypeStruct((padded_batch, out_store), jnp.float32),
        grid=grid,
        in_specs=[
            pl.BlockSpec((tb, state_dim), lambda i: (i, 0)),   # x tile over batch
            pl.BlockSpec((state_dim, H1), resident),           # w1
            pl.BlockSpec((1, H1), resident),                   # b1
            pl.BlockSpec((H1, H2), resident),                  # w2
            pl.BlockSpec((1, H2), resident),                   # b2
            pl.BlockSpec((H2, OUT_PAD), resident),             # w3 (lane-padded)
            pl.BlockSpec((1, OUT_PAD), resident),              # b3 (lane-padded)
        ],
        out_specs=pl.BlockSpec((tb, out_store), lambda i: (i, 0)),
        compiler_params=pltpu.CompilerParams(
            dimension_semantics=("parallel",),       # shard batch across TCs on v7x
            vmem_limit_bytes=32 * 1024 * 1024,       # ample headroom on all gens
        ),
    )(x, w1, b1, w2, b2, w3, b3)

    return out[:batch, :action_dim]


def init_params(key, state_dim, action_dim):
    """PyTorch-Linear-style init: U(-1/sqrt(fan_in), 1/sqrt(fan_in)).
    Weights stored pre-transposed (in, out) in bf16; biases (1, out) in f32.
    fc3 is zero-padded to OUT_PAD columns with -1e30 padded bias entries (the
    padded-lane trick requires the bias / logits to remain f32)."""
    dims = [(state_dim, H1), (H1, H2), (H2, action_dim)]
    params = {"action_dim": action_dim}
    keys = jax.random.split(key, 2 * len(dims))
    for i, (fan_in, fan_out) in enumerate(dims):
        bound = 1.0 / (fan_in ** 0.5)
        w = jax.random.uniform(keys[2 * i], (fan_in, fan_out), jnp.float32, -bound, bound)
        b = jax.random.uniform(keys[2 * i + 1], (1, fan_out), jnp.float32, -bound, bound)
        if i == 2:  # lane-dense fc3
            w = jnp.pad(w, ((0, 0), (0, OUT_PAD - action_dim)))
            b = jnp.pad(b, ((0, 0), (0, OUT_PAD - action_dim)), constant_values=NEG_BIG)
        params[f"w{i+1}"] = w.astype(jnp.bfloat16)
        params[f"b{i+1}"] = b.astype(jnp.float32)
    return params


def p_net_reference(x, params):
    """Pure-JAX reference (f32 math on the same bf16 weights)."""
    w1 = params["w1"].astype(jnp.float32)
    w2 = params["w2"].astype(jnp.float32)
    w3 = params["w3"].astype(jnp.float32)
    h1 = jax.nn.sigmoid(x @ w1 + params["b1"])
    h2 = jax.nn.sigmoid(h1 @ w2 + params["b2"])
    logits = h2 @ w3 + params["b3"]
    return jax.nn.softmax(logits, axis=-1)[:, : params["action_dim"]]


if __name__ == "__main__":
    state_dim = 16
    action_dim = 4
    batch = 8

    key = jax.random.PRNGKey(0)
    k_x, k_p = jax.random.split(key)
    x = jax.random.normal(k_x, (batch, state_dim), dtype=jnp.float32)
    params = init_params(k_p, state_dim, action_dim)

    try:
        out = jax.block_until_ready(p_net_forward(x, params))
    except Exception:
        # Safety net: if the bf16 elementwise variant fails to lower on this
        # chip / jax version, fall back to the always-supported f32 path.
        out = jax.block_until_ready(p_net_forward(x, params, use_bf16_act=False))

    # sanity: shape, rows sum to ~1 (approx reciprocal), matches f32 reference
    assert out.shape == (batch, action_dim)
    assert bool(jnp.allclose(jnp.sum(out, axis=-1), 1.0, atol=1e-2))
    ref = p_net_reference(x, params)
    assert bool(jnp.allclose(out, ref, atol=4e-2))

    print("KERNEL_OK")
</pallas_src>

<mosaic_0001>
module attributes {stable_mosaic.version = 11 : i64} {
  func.func @_pnet_kernel(%arg0: i32, %arg1: memref<8x16xf32, #tpu.memory_space<vmem>>, %arg2: memref<16x256xbf16, #tpu.memory_space<vmem>>, %arg3: memref<1x256xf32, #tpu.memory_space<vmem>>, %arg4: memref<256x128xbf16, #tpu.memory_space<vmem>>, %arg5: memref<1x128xf32, #tpu.memory_space<vmem>>, %arg6: memref<128x128xbf16, #tpu.memory_space<vmem>>, %arg7: memref<1x128xf32, #tpu.memory_space<vmem>>, %arg8: memref<8x8xf32, #tpu.memory_space<vmem>>) attributes {dimension_semantics = [#tpu.dimension_semantics<parallel>], iteration_bounds = array<i64: 1>, scalar_prefetch = 0 : i64, scratch_operands = 0 : i64, tpu.core_type = #tpu.core_type<tc>, window_params = [{transform_indices = @transform_0, window_bounds = array<i64: 8, 16>}, {pipeline_mode = #tpu.pipeline_mode<synchronous>, transform_indices = @transform_1, window_bounds = array<i64: 16, 256>}, {pipeline_mode = #tpu.pipeline_mode<synchronous>, transform_indices = @transform_2, window_bounds = array<i64: 1, 256>}, {pipeline_mode = #tpu.pipeline_mode<synchronous>, transform_indices = @transform_3, window_bounds = array<i64: 256, 128>}, {pipeline_mode = #tpu.pipeline_mode<synchronous>, transform_indices = @transform_4, window_bounds = array<i64: 1, 128>}, {pipeline_mode = #tpu.pipeline_mode<synchronous>, transform_indices = @transform_5, window_bounds = array<i64: 128, 128>}, {pipeline_mode = #tpu.pipeline_mode<synchronous>, transform_indices = @transform_6, window_bounds = array<i64: 1, 128>}, {transform_indices = @transform_7, window_bounds = array<i64: 8, 8>}]} {
    %c0 = arith.constant 0 : index
    %c0_0 = arith.constant 0 : index
    %0 = vector.load %arg1[%c0, %c0_0] : memref<8x16xf32, #tpu.memory_space<vmem>>, vector<8x16xf32>
    %1 = arith.truncf %0 : vector<8x16xf32> to vector<8x16xbf16>
    %c0_1 = arith.constant 0 : index
    %c0_2 = arith.constant 0 : index
    %2 = vector.load %arg2[%c0_1, %c0_2] : memref<16x256xbf16, #tpu.memory_space<vmem>>, vector<16x256xbf16>
    %cst = arith.constant dense<0.000000e+00> : vector<8x256xf32>
    %3 = tpu.matmul %1, %2, %cst {dimension_numbers = #tpu.dot_dimension_numbers<[1], [0], [0], [1], [0, 0, 1, 1], [], []>} : vector<8x16xbf16>, vector<16x256xbf16>, vector<8x256xf32> -> vector<8x256xf32>
    %c0_3 = arith.constant 0 : index
    %c0_4 = arith.constant 0 : index
    %4 = vector.load %arg3[%c0_3, %c0_4] : memref<1x256xf32, #tpu.memory_space<vmem>>, vector<1x256xf32>
    %5 = vector.broadcast %4 : vector<1x256xf32> to vector<8x256xf32>
    %6 = arith.addf %3, %5 : vector<8x256xf32>
    %cst_5 = arith.constant 0.000000e+00 : f32
    %7 = vector.broadcast %cst_5 : f32 to vector<8x256xf32>
    %8 = arith.subf %7, %6 : vector<8x256xf32>
    %9 = math.exp %8 : vector<8x256xf32>
    %cst_6 = arith.constant 1.000000e+00 : f32
    %10 = vector.broadcast %cst_6 : f32 to vector<8x256xf32>
    %11 = arith.addf %10, %9 : vector<8x256xf32>
    %12 = tpu.reciprocal %11 {approx = true} : vector<8x256xf32> -> vector<8x256xf32>
    %13 = arith.truncf %12 : vector<8x256xf32> to vector<8x256xbf16>
    %c0_7 = arith.constant 0 : index
    %c0_8 = arith.constant 0 : index
    %14 = vector.load %arg4[%c0_7, %c0_8] : memref<256x128xbf16, #tpu.memory_space<vmem>>, vector<256x128xbf16>
    %cst_9 = arith.constant dense<0.000000e+00> : vector<8x128xf32>
    %15 = tpu.matmul %13, %14, %cst_9 {dimension_numbers = #tpu.dot_dimension_numbers<[1], [0], [0], [1], [0, 0, 1, 1], [], []>} : vector<8x256xbf16>, vector<256x128xbf16>, vector<8x128xf32> -> vector<8x128xf32>
    %c0_10 = arith.constant 0 : index
    %c0_11 = arith.constant 0 : index
    %16 = vector.load %arg5[%c0_10, %c0_11] : memref<1x128xf32, #tpu.memory_space<vmem>>, vector<1x128xf32>
    %17 = vector.broadcast %16 : vector<1x128xf32> to vector<8x128xf32>
    %18 = arith.addf %15, %17 : vector<8x128xf32>
    %cst_12 = arith.constant 0.000000e+00 : f32
    %19 = vector.broadcast %cst_12 : f32 to vector<8x128xf32>
    %20 = arith.subf %19, %18 : vector<8x128xf32>
    %21 = math.exp %20 : vector<8x128xf32>
    %cst_13 = arith.constant 1.000000e+00 : f32
    %22 = vector.broadcast %cst_13 : f32 to vector<8x128xf32>
    %23 = arith.addf %22, %21 : vector<8x128xf32>
    %24 = tpu.reciprocal %23 {approx = true} : vector<8x128xf32> -> vector<8x128xf32>
    %25 = arith.truncf %24 : vector<8x128xf32> to vector<8x128xbf16>
    %c0_14 = arith.constant 0 : index
    %c0_15 = arith.constant 0 : index
    %26 = vector.load %arg6[%c0_14, %c0_15] : memref<128x128xbf16, #tpu.memory_space<vmem>>, vector<128x128xbf16>
    %cst_16 = arith.constant dense<0.000000e+00> : vector<8x128xf32>
    %27 = tpu.matmul %25, %26, %cst_16 {dimension_numbers = #tpu.dot_dimension_numbers<[1], [0], [0], [1], [0, 0, 1, 1], [], []>} : vector<8x128xbf16>, vector<128x128xbf16>, vector<8x128xf32> -> vector<8x128xf32>
    %c0_17 = arith.constant 0 : index
    %c0_18 = arith.constant 0 : index
    %28 = vector.load %arg7[%c0_17, %c0_18] : memref<1x128xf32, #tpu.memory_space<vmem>>, vector<1x128xf32>
    %29 = vector.broadcast %28 : vector<1x128xf32> to vector<8x128xf32>
    %30 = arith.addf %27, %29 : vector<8x128xf32>
    %cst_19 = arith.constant dense<0xFF800000> : vector<8xf32>
    %31 = vector.multi_reduction <maximumf>, %30, %cst_19 [1] : vector<8x128xf32> to vector<8xf32>
    %32 = vector.shape_cast %31 : vector<8xf32> to vector<8x1xf32>
    %33 = vector.broadcast %32 : vector<8x1xf32> to vector<8x128xf32>
    %34 = arith.subf %30, %33 : vector<8x128xf32>
    %35 = math.exp %34 : vector<8x128xf32>
    %cst_20 = arith.constant dense<0.000000e+00> : vector<8xf32>
    %36 = vector.multi_reduction <add>, %35, %cst_20 [1] : vector<8x128xf32> to vector<8xf32>
    %37 = vector.shape_cast %36 : vector<8xf32> to vector<8x1xf32>
    %38 = tpu.reciprocal %37 {approx = true} : vector<8x1xf32> -> vector<8x1xf32>
    %39 = vector.broadcast %38 : vector<8x1xf32> to vector<8x128xf32>
    %40 = arith.mulf %35, %39 : vector<8x128xf32>
    %41 = vector.extract_strided_slice %40 {offsets = [0, 0], sizes = [8, 8], strides = [1, 1]} : vector<8x128xf32> to vector<8x8xf32>
    %c0_21 = arith.constant 0 : index
    %c0_22 = arith.constant 0 : index
    %42 = vector.load %arg8[%c0_21, %c0_22] : memref<8x8xf32, #tpu.memory_space<vmem>>, vector<8x8xf32>
    tpu.vector_store %arg8[%c0_21, %c0_22], %41 {strides = array<i32>} : memref<8x8xf32, #tpu.memory_space<vmem>>, vector<8x8xf32>,
    return
  }
  func.func @transform_0(%arg0: i32) -> (i32, i32) {
    %c0_i32 = arith.constant 0 : i32
    %c0_i32_0 = arith.constant 0 : i32
    return %arg0, %c0_i32 : i32, i32
  }
  func.func @transform_1(%arg0: i32) -> (i32, i32) {
    %c0_i32 = arith.constant 0 : i32
    %c0_i32_0 = arith.constant 0 : i32
    %c0_i32_1 = arith.constant 0 : i32
    return %c0_i32, %c0_i32_0 : i32, i32
  }
  func.func @transform_2(%arg0: i32) -> (i32, i32) {
    %c0_i32 = arith.constant 0 : i32
    %c0_i32_0 = arith.constant 0 : i32
    %c0_i32_1 = arith.constant 0 : i32
    return %c0_i32, %c0_i32_0 : i32, i32
  }
  func.func @transform_3(%arg0: i32) -> (i32, i32) {
    %c0_i32 = arith.constant 0 : i32
    %c0_i32_0 = arith.constant 0 : i32
    %c0_i32_1 = arith.constant 0 : i32
    return %c0_i32, %c0_i32_0 : i32, i32
  }
  func.func @transform_4(%arg0: i32) -> (i32, i32) {
    %c0_i32 = arith.constant 0 : i32
    %c0_i32_0 = arith.constant 0 : i32
    %c0_i32_1 = arith.constant 0 : i32
    return %c0_i32, %c0_i32_0 : i32, i32
  }
  func.func @transform_5(%arg0: i32) -> (i32, i32) {
    %c0_i32 = arith.constant 0 : i32
    %c0_i32_0 = arith.constant 0 : i32
    %c0_i32_1 = arith.constant 0 : i32
    return %c0_i32, %c0_i32_0 : i32, i32
  }
  func.func @transform_6(%arg0: i32) -> (i32, i32) {
    %c0_i32 = arith.constant 0 : i32
    %c0_i32_0 = arith.constant 0 : i32
    %c0_i32_1 = arith.constant 0 : i32
    return %c0_i32, %c0_i32_0 : i32, i32
  }
  func.func @transform_7(%arg0: i32) -> (i32, i32) {
    %c0_i32 = arith.constant 0 : i32
    %c0_i32_0 = arith.constant 0 : i32
    return %arg0, %c0_i32 : i32, i32
  }
}

module attributes {stable_mosaic.version = 11 : i64} {
  func.func @_pnet_kernel(%arg0: i32, %arg1: memref<8x16xf32, #tpu.memory_space<vmem>>, %arg2: memref<16x256xbf16, #tpu.memory_space<vmem>>, %arg3: memref<1x256xf32, #tpu.memory_space<vmem>>, %arg4: memref<256x128xbf16, #tpu.memory_space<vmem>>, %arg5: memref<1x128xf32, #tpu.memory_space<vmem>>, %arg6: memref<128x128xbf16, #tpu.memory_space<vmem>>, %arg7: memref<1x128xf32, #tpu.memory_space<vmem>>, %arg8: memref<8x8xf32, #tpu.memory_space<vmem>>) attributes {dimension_semantics = [#tpu.dimension_semantics<parallel>], iteration_bounds = array<i64: 1>, scalar_prefetch = 0 : i64, scratch_operands = 0 : i64, tpu.core_type = #tpu.core_type<tc>, window_params = [{transform_indices = @transform_0, window_bounds = array<i64: 8, 16>}, {pipeline_mode = #tpu.pipeline_mode<synchronous>, transform_indices = @transform_1, window_bounds = array<i64: 16, 256>}, {pipeline_mode = #tpu.pipeline_mode<synchronous>, transform_indices = @transform_2, window_bounds = array<i64: 1, 256>}, {pipeline_mode = #tpu.pipeline_mode<synchronous>, transform_indices = @transform_3, window_bounds = array<i64: 256, 128>}, {pipeline_mode = #tpu.pipeline_mode<synchronous>, transform_indices = @transform_4, window_bounds = array<i64: 1, 128>}, {pipeline_mode = #tpu.pipeline_mode<synchronous>, transform_indices = @transform_5, window_bounds = array<i64: 128, 128>}, {pipeline_mode = #tpu.pipeline_mode<synchronous>, transform_indices = @transform_6, window_bounds = array<i64: 1, 128>}, {transform_indices = @transform_7, window_bounds = array<i64: 8, 8>}]} {
    %c0 = arith.constant 0 : index
    %c0_0 = arith.constant 0 : index
    %0 = vector.load %arg1[%c0, %c0_0] : memref<8x16xf32, #tpu.memory_space<vmem>>, vector<8x16xf32>
    %1 = arith.truncf %0 : vector<8x16xf32> to vector<8x16xbf16>
    %c0_1 = arith.constant 0 : index
    %c0_2 = arith.constant 0 : index
    %2 = vector.load %arg2[%c0_1, %c0_2] : memref<16x256xbf16, #tpu.memory_space<vmem>>, vector<16x256xbf16>
    %cst = arith.constant dense<0.000000e+00> : vector<8x256xf32>
    %3 = tpu.matmul %1, %2, %cst {dimension_numbers = #tpu.dot_dimension_numbers<[1], [0], [0], [1], [0, 0, 1, 1], [], []>} : vector<8x16xbf16>, vector<16x256xbf16>, vector<8x256xf32> -> vector<8x256xf32>
    %c0_3 = arith.constant 0 : index
    %c0_4 = arith.constant 0 : index
    %4 = vector.load %arg3[%c0_3, %c0_4] : memref<1x256xf32, #tpu.memory_space<vmem>>, vector<1x256xf32>
    %5 = vector.broadcast %4 : vector<1x256xf32> to vector<8x256xf32>
    %6 = arith.addf %3, %5 : vector<8x256xf32>
    %cst_5 = arith.constant 0.000000e+00 : f32
    %7 = vector.broadcast %cst_5 : f32 to vector<8x256xf32>
    %8 = arith.subf %7, %6 : vector<8x256xf32>
    %9 = math.exp %8 : vector<8x256xf32>
    %cst_6 = arith.constant 1.000000e+00 : f32
    %10 = vector.broadcast %cst_6 : f32 to vector<8x256xf32>
    %11 = arith.addf %10, %9 : vector<8x256xf32>
    %12 = tpu.reciprocal %11 {approx = true} : vector<8x256xf32> -> vector<8x256xf32>
    %13 = arith.truncf %12 : vector<8x256xf32> to vector<8x256xbf16>
    %c0_7 = arith.constant 0 : index
    %c0_8 = arith.constant 0 : index
    %14 = vector.load %arg4[%c0_7, %c0_8] : memref<256x128xbf16, #tpu.memory_space<vmem>>, vector<256x128xbf16>
    %cst_9 = arith.constant dense<0.000000e+00> : vector<8x128xf32>
    %15 = tpu.matmul %13, %14, %cst_9 {dimension_numbers = #tpu.dot_dimension_numbers<[1], [0], [0], [1], [0, 0, 1, 1], [], []>} : vector<8x256xbf16>, vector<256x128xbf16>, vector<8x128xf32> -> vector<8x128xf32>
    %c0_10 = arith.constant 0 : index
    %c0_11 = arith.constant 0 : index
    %16 = vector.load %arg5[%c0_10, %c0_11] : memref<1x128xf32, #tpu.memory_space<vmem>>, vector<1x128xf32>
    %17 = vector.broadcast %16 : vector<1x128xf32> to vector<8x128xf32>
    %18 = arith.addf %15, %17 : vector<8x128xf32>
    %cst_12 = arith.constant 0.000000e+00 : f32
    %19 = vector.broadcast %cst_12 : f32 to vector<8x128xf32>
    %20 = arith.subf %19, %18 : vector<8x128xf32>
    %21 = math.exp %20 : vector<8x128xf32>
    %cst_13 = arith.constant 1.000000e+00 : f32
    %22 = vector.broadcast %cst_13 : f32 to vector<8x128xf32>
    %23 = arith.addf %22, %21 : vector<8x128xf32>
    %24 = tpu.reciprocal %23 {approx = true} : vector<8x128xf32> -> vector<8x128xf32>
    %25 = arith.truncf %24 : vector<8x128xf32> to vector<8x128xbf16>
    %c0_14 = arith.constant 0 : index
    %c0_15 = arith.constant 0 : index
    %26 = vector.load %arg6[%c0_14, %c0_15] : memref<128x128xbf16, #tpu.memory_space<vmem>>, vector<128x128xbf16>
    %cst_16 = arith.constant dense<0.000000e+00> : vector<8x128xf32>
    %27 = tpu.matmul %25, %26, %cst_16 {dimension_numbers = #tpu.dot_dimension_numbers<[1], [0], [0], [1], [0, 0, 1, 1], [], []>} : vector<8x128xbf16>, vector<128x128xbf16>, vector<8x128xf32> -> vector<8x128xf32>
    %c0_17 = arith.constant 0 : index
    %c0_18 = arith.constant 0 : index
    %28 = vector.load %arg7[%c0_17, %c0_18] : memref<1x128xf32, #tpu.memory_space<vmem>>, vector<1x128xf32>
    %29 = vector.broadcast %28 : vector<1x128xf32> to vector<8x128xf32>
    %30 = arith.addf %27, %29 : vector<8x128xf32>
    %cst_19 = arith.constant dense<0xFF800000> : vector<8xf32>
    %31 = vector.multi_reduction <maximumf>, %30, %cst_19 [1] : vector<8x128xf32> to vector<8xf32>
    %32 = vector.shape_cast %31 : vector<8xf32> to vector<8x1xf32>
    %33 = vector.broadcast %32 : vector<8x1xf32> to vector<8x128xf32>
    %34 = arith.subf %30, %33 : vector<8x128xf32>
    %35 = math.exp %34 : vector<8x128xf32>
    %cst_20 = arith.constant dense<0.000000e+00> : vector<8xf32>
    %36 = vector.multi_reduction <add>, %35, %cst_20 [1] : vector<8x128xf32> to vector<8xf32>
    %37 = vector.shape_cast %36 : vector<8xf32> to vector<8x1xf32>
    %38 = tpu.reciprocal %37 {approx = true} : vector<8x1xf32> -> vector<8x1xf32>
    %39 = vector.broadcast %38 : vector<8x1xf32> to vector<8x128xf32>
    %40 = arith.mulf %35, %39 : vector<8x128xf32>
    %41 = vector.extract_strided_slice %40 {offsets = [0, 0], sizes = [8, 8], strides = [1, 1]} : vector<8x128xf32> to vector<8x8xf32>
    %c0_21 = arith.constant 0 : index
    %c0_22 = arith.constant 0 : index
    %42 = vector.load %arg8[%c0_21, %c0_22] : memref<8x8xf32, #tpu.memory_space<vmem>>, vector<8x8xf32>
    tpu.vector_store %arg8[%c0_21, %c0_22], %41 {strides = array<i32>} : memref<8x8xf32, #tpu.memory_space<vmem>>, vector<8x8xf32>,
    return
  }
  func.func @transform_0(%arg0: i32) -> (i32, i32) {
    %c0_i32 = arith.constant 0 : i32
    %c0_i32_0 = arith.constant 0 : i32
    return %arg0, %c0_i32 : i32, i32
  }
  func.func @transform_1(%arg0: i32) -> (i32, i32) {
    %c0_i32 = arith.constant 0 : i32
    %c0_i32_0 = arith.constant 0 : i32
    %c0_i32_1 = arith.constant 0 : i32
    return %c0_i32, %c0_i32_0 : i32, i32
  }
  func.func @transform_2(%arg0: i32) -> (i32, i32) {
    %c0_i32 = arith.constant 0 : i32
    %c0_i32_0 = arith.constant 0 : i32
    %c0_i32_1 = arith.constant 0 : i32
    return %c0_i32, %c0_i32_0 : i32, i32
  }
  func.func @transform_3(%arg0: i32) -> (i32, i32) {
    %c0_i32 = arith.constant 0 : i32
    %c0_i32_0 = arith.constant 0 : i32
    %c0_i32_1 = arith.constant 0 : i32
    return %c0_i32, %c0_i32_0 : i32, i32
  }
  func.func @transform_4(%arg0: i32) -> (i32, i32) {
    %c0_i32 = arith.constant 0 : i32
    %c0_i32_0 = arith.constant 0 : i32
    %c0_i32_1 = arith.constant 0 : i32
    return %c0_i32, %c0_i32_0 : i32, i32
  }
  func.func @transform_5(%arg0: i32) -> (i32, i32) {
    %c0_i32 = arith.constant 0 : i32
    %c0_i32_0 = arith.constant 0 : i32
    %c0_i32_1 = arith.constant 0 : i32
    return %c0_i32, %c0_i32_0 : i32, i32
  }
  func.func @transform_6(%arg0: i32) -> (i32, i32) {
    %c0_i32 = arith.constant 0 : i32
    %c0_i32_0 = arith.constant 0 : i32
    %c0_i32_1 = arith.constant 0 : i32
    return %c0_i32, %c0_i32_0 : i32, i32
  }
  func.func @transform_7(%arg0: i32) -> (i32, i32) {
    %c0_i32 = arith.constant 0 : i32
    %c0_i32_0 = arith.constant 0 : i32
    return %arg0, %c0_i32 : i32, i32
  }
}

</mosaic_0001>

<bundles_post_ra>
// kernel: tpu_custom_call.1
= control target key start
LH: loop header
LB: loop body
LE: loop exit
PB: predicated region body
PF: predicated region fallthrough
CT: control target
= control target key end

     0   :  { %12 = vsyncpa [#allocation3], 0  ;;  %s858_s0 = inlined_call_operand.hbm [shape: f32[8,16], index: 0, kind: input, shape index: {}]   ;;  %s859_s1 = inlined_call_operand.hbm [shape: bf16[16,256], index: 1, kind: input, shape index: {}]   ;;  %s860_s2 = inlined_call_operand.vmem [shape: f32[1,256], index: 2, kind: input, shape index: {}]   ;;  %s861_s3 = inlined_call_operand.hbm [shape: bf16[256,128], index: 3, kind: input, shape index: {}]   ;;  %s862_s4 = inlined_call_operand.vmem [shape: f32[1,128], index: 4, kind: input, shape index: {}]   ;;  %s863_s5 = inlined_call_operand.hbm [shape: bf16[128,128], index: 5, kind: input, shape index: {}]   ;;  %s864_s6 = inlined_call_operand.vmem [shape: f32[1,128], index: 6, kind: input, shape index: {}]   ;;  %s865_s7 = inlined_call_operand.hbm [shape: f32[8,8], index: 7, kind: output, shape index: {}]  }
   0x1   :  { %13 = vsyncpa [#allocation6], 0 }
   0x2   :  { %14 = vsyncpa [#allocation9], 0 }
   0x3   :  { %15 = vsyncpa [#allocation4], 0  ;;  %s737_s24 = smov [#allocation5]   ;;  %s619_s28 = scalar_lea.hbm %s859_s1, 256 }
   0x4   :  { %s31_s25 = sshll.u32 %s737_s24, 4  ;;  %p620_p0 = scmp.ne.s32.totalorder %s859_s1, %s619_s28  ;;  %s32_s25 = int_to_ptr.vmem [resolvable:$true] %s31_s25 }
   0x5   :  { %p623_p1 = scmp.lt.u32.totalorder %s619_s28, %s859_s1 }
   0x7   :  { %p625_p2 = pnand %p623_p1, %p620_p0 }
   0x9   :  { %628 = shalt.err (!%p625_p2)
}
   0xa   :  { %s629_s10 = scalar_lea.vmem %s32_s25, 256  ;;  %p634_p4 = scmp.lt.s32.totalorder %s32_s25, %s32_s25 }
   0xb   :  { %p630_p3 = scmp.ne.s32.totalorder %s32_s25, %s629_s10  ;;  %p635_p5 = scmp.lt.s32.totalorder %s629_s10, %s629_s10 }
   0xd   :  { %p636_p6 = por %p635_p5, %p634_p4 }
   0xf   :  { %p637_p7 = pnand %p636_p6, %p630_p3 }
  0x11   :  { %640 = shalt.err (!%p637_p7)
}
  0x12   :  { %s738_s11 = smov 128   ;;  %s739_s12 = smov 8  }
  0x13   :  { %37 = dma.hbm_to_vmem [thread:$0]  %s859_s1, 256, %s32_s25, [#allocation6], %s738_s11, %s738_s11, %s739_s12  }
  0x14   :  { %s740_s15 = smov [#allocation2]   ;;  %s741_s17 = smov [#allocation7]  }
  0x15   :  { %s22_s16 = sshll.u32 %s740_s15, 4  ;;  %s45_s18 = sshll.u32 %s741_s17, 4  ;;  %s23_s16 = int_to_ptr.vmem [resolvable:$true] %s22_s16  ;;  %s46_s18 = int_to_ptr.vmem [resolvable:$true] %s45_s18 }
  0x16   :  { %s641_s21 = scalar_lea.hbm %s858_s0, 128 }
  0x17   :  { %p642_p8 = scmp.ne.s32.totalorder %s858_s0, %s641_s21  ;;  %p645_p9 = scmp.lt.u32.totalorder %s641_s21, %s858_s0 }
  0x19   :  { %p647_p10 = pnand %p645_p9, %p642_p8 }
  0x1b   :  { %650 = shalt.err (!%p647_p10)
}
  0x1c   :  { %s651_s1 = scalar_lea.vmem %s23_s16, 128  ;;  %p656_p12 = scmp.lt.s32.totalorder %s23_s16, %s23_s16 }
  0x1d   :  { %p652_p11 = scmp.ne.s32.totalorder %s23_s16, %s651_s1  ;;  %p657_p13 = scmp.lt.s32.totalorder %s651_s1, %s651_s1 }
  0x1f   :  { %p658_p0 = por %p657_p13, %p656_p12 }
  0x21   :  { %p659_p1 = pnand %p658_p0, %p652_p11 }
  0x23   :  { %662 = shalt.err (!%p659_p1)
}
  0x24   :  { %25 = dma.hbm_to_vmem [thread:$0]  %s858_s0, 128, %s23_s16, [#allocation3]  }
  0x25   :  { %s663_s30 = scalar_lea.hbm %s861_s3, 2048 }
  0x26   :  { %p664_p2 = scmp.ne.s32.totalorder %s861_s3, %s663_s30  ;;  %p667_p3 = scmp.lt.u32.totalorder %s663_s30, %s861_s3 }
  0x28   :  { %p669_p4 = pnand %p667_p3, %p664_p2 }
  0x2a   :  { %672 = shalt.err (!%p669_p4)
}
  0x2b   :  { %s673_s12 = scalar_lea.vmem %s46_s18, 2048  ;;  %p678_p6 = scmp.lt.s32.totalorder %s46_s18, %s46_s18 }
  0x2c   :  { %p674_p5 = scmp.ne.s32.totalorder %s46_s18, %s673_s12  ;;  %p679_p7 = scmp.lt.s32.totalorder %s673_s12, %s673_s12 }
  0x2e   :  { %p680_p8 = por %p679_p7, %p678_p6 }
  0x30   :  { %p681_p9 = pnand %p680_p8, %p674_p5 }
  0x32   :  { %684 = shalt.err (!%p681_p9)
}
  0x33   :  { %s742_s0 = smov 64   ;;  %s743_s13 = smov 4  }
  0x34   :  { %51 = dma.hbm_to_vmem [thread:$0]  %s861_s3, 2048, %s46_s18, [#allocation6], %s742_s0, %s742_s0, %s743_s13  }
  0x35   :  { %s744_s16 = smov [#allocation8]   ;;  %s685_s21 = scalar_lea.hbm %s863_s5, 1024 }
  0x36   :  { %s59_s17 = sshll.u32 %s744_s16, 4  ;;  %p686_p10 = scmp.ne.s32.totalorder %s863_s5, %s685_s21  ;;  %s60_s17 = int_to_ptr.vmem [resolvable:$true] %s59_s17 }
  0x37   :  { %p689_p11 = scmp.lt.u32.totalorder %s685_s21, %s863_s5 }
  0x39   :  { %p691_p12 = pnand %p689_p11, %p686_p10 }
  0x3b   :  { %694 = shalt.err (!%p691_p12)
}
  0x3c   :  { %s695_s1 = scalar_lea.vmem %s60_s17, 1024  ;;  %p700_p0 = scmp.lt.s32.totalorder %s60_s17, %s60_s17 }
  0x3d   :  { %p696_p13 = scmp.ne.s32.totalorder %s60_s17, %s695_s1  ;;  %p701_p1 = scmp.lt.s32.totalorder %s695_s1, %s695_s1 }
  0x3f   :  { %p702_p2 = por %p701_p1, %p700_p0 }
  0x41   :  { %p703_p3 = pnand %p702_p2, %p696_p13 }
  0x43   :  { %706 = shalt.err (!%p703_p3)
}
  0x44   :  { %65 = dma.hbm_to_vmem [thread:$0]  %s863_s5, 1024, %s60_s17, [#allocation9], %s742_s0, %s742_s0, %s743_s13  }
  0x45   :  { %729 = dma.done.wait [#allocation3], 128  }
  0x46   :  { %730 = vsyncadd [#allocation3], 4294967168 }
  0x47   :  { %731 = dma.done.wait [#allocation6], 2304  }
  0x48   :  { %732 = vsyncadd [#allocation6], 4294964992 }
  0x49   :  { %733 = dma.done.wait [#allocation9], 1024  }
  0x4a   :  { %734 = vsyncadd [#allocation9], 4294966272  ;;  %v745_v0 = vmov 0   ;;  %v576_v1 = vld [vmem:[#allocation5 + $0x4] ss:$8 sps:$4 sm:$0xff]   ;;  %v81_v3 = vld [vmem:[#allocation2] sm:$0xff]  ;;  %v87_v21 = vlaneseq }
  0x4b   :  { %143 = vmatprep.mubr.bf16.mxu0 %v745_v0  ;;  %v578_v2 = vld [vmem:[#allocation5] ss:$8 sps:$4 sm:$0xff]   ;;  %vm107_vm0 = vcmask 130048   ;;  %111 = vmatprep.subr.bf16.mxu0 %v576_v1  ;;  %v82_v4 = vpack.c.bf16 %v81_v3, %v81_v3  ;;  %v579_v5 = vld [vmem:[#allocation7 + $0x40] sm:$0xff]   ;;  %v581_v7 = vld [vmem:[#allocation7 + $0x48] sm:$0xff]   ;;  %v746_v47 = vmov 0.0  }
  0x4c   :  { %112 = vmatpush1.bf16.msra.mxu0 %v578_v2  ;;  %v580_v6 = vld [vmem:[#allocation7] sm:$0xff]   ;;  %513 = vmatprep.subr.bf16.mxu1 %v579_v5  ;;  %v582_v8 = vld [vmem:[#allocation7 + $0x8] sm:$0xff]   ;;  %v583_v9 = vld [vmem:[#allocation7 + $0x50] sm:$0xff]   ;;  %v88_v22 = vshrl.u32 %v87_v21, 7  ;;  %vm747_vm1 = vmmov 0   ;;  %vm465_vm2 = vcmask 64512  }
  0x4d   :  { %514 = vmatpush3.bf16.msra.mxu1 %v580_v6  ;;  %v584_v10 = vld [vmem:[#allocation7 + $0x10] sm:$0xff]   ;;  %v585_v11 = vld [vmem:[#allocation7 + $0x58] sm:$0xff]   ;;  %v587_v13 = vld [vmem:[#allocation7 + $0x60] sm:$0xff]   ;;  %544 = vmatprep.subr.bf16.mxu0 %v746_v47 }
  0x4e   :  { %515 = vmatprep.subr.bf16.mxu1 %v581_v7  ;;  %v586_v12 = vld [vmem:[#allocation7 + $0x18] sm:$0xff]   ;;  %v588_v14 = vld [vmem:[#allocation7 + $0x20] sm:$0xff]   ;;  %v589_v15 = vld [vmem:[#allocation7 + $0x68] sm:$0xff]   ;;  %v89_v23 = vsub.s32 0, %v88_v22  ;;  %v93_v25 = vsub.s32 1, %v88_v22 }
  0x4f   :  { %486 = vmatmul.mubr.msk.bf16.vlgmr.msra.gmra.mrb[0].mxu0 %vm107_vm0, %v82_v4  ;;  %v590_v16 = vld [vmem:[#allocation7 + $0x28] sm:$0xff]   ;;  %v591_v17 = vld [vmem:[#allocation7 + $0x70] sm:$0xff]   ;;  %v593_v19 = vld [vmem:[#allocation7 + $0x78] sm:$0xff]  }
  0x50   :  { %v592_v18 = vld [vmem:[#allocation7 + $0x30] sm:$0xff]   ;;  %v594_v20 = vld [vmem:[#allocation7 + $0x38] sm:$0xff]   ;;  %v85_v24 = vld [vmem:[%s860_s2] sm:$0x3]  ;;  %560 = vmatprep.mubr.msk.bf16.mxu0 %vm747_vm1, %v746_v47 }
  0x51   :  { %516 = vmatpush3.bf16.msra.mxu1 %v582_v8  ;;  %v90_v26 = vrot.slane %v85_v24, %v89_v23  ;;  %v94_v27 = vrot.slane %v85_v24, %v93_v25  ;;  %v595_v46 = vld [vmem:[#allocation8] sm:$0xff]   ;;  %v596_v48 = vld [vmem:[#allocation8 + $0x8] sm:$0xff]   ;;  %v597_v49 = vld [vmem:[#allocation8 + $0x10] sm:$0xff]  }
  0x52   :  { %517 = vmatprep.subr.bf16.mxu1 %v583_v9  ;;  %545 = vmatpush3.bf16.msra.mxu0 %v595_v46  ;;  %v598_v50 = vld [vmem:[#allocation8 + $0x18] sm:$0xff]   ;;  %v599_v51 = vld [vmem:[#allocation8 + $0x20] sm:$0xff]   ;;  %v600_v52 = vld [vmem:[#allocation8 + $0x28] sm:$0xff]  }
  0x53   :  { %546 = vmatprep.subr.bf16.mxu0 %v746_v47  ;;  %v601_v53 = vld [vmem:[#allocation8 + $0x30] sm:$0xff]   ;;  %v602_v54 = vld [vmem:[#allocation8 + $0x38] sm:$0xff]   ;;  %v487_v56 = vld [vmem:[%s862_s4] ss:$0 sm:$0xff]  ;;  %s748_s4 = smov [#allocation10]  }
  0x54   :  { %v504_v4 = vld [vmem:[%s864_s6] ss:$0 sm:$0xff]  ;;  %s473_s30 = sshll.u32 %s748_s4, 4  ;;  %s474_s30 = int_to_ptr.vmem [resolvable:$true] %s473_s30 }
  0x55   :  { %518 = vmatpush3.bf16.msra.mxu1 %v584_v10  ;;  %s707_s6 = scalar_lea.vmem %s474_s30, 128  ;;  %p712_p5 = scmp.lt.s32.totalorder %s474_s30, %s474_s30 }
  0x56   :  { %519 = vmatprep.subr.bf16.mxu1 %v585_v11  ;;  %547 = vmatpush3.bf16.msra.mxu0 %v596_v48  ;;  %p708_p4 = scmp.ne.s32.totalorder %s474_s30, %s707_s6  ;;  %p713_p6 = scmp.lt.s32.totalorder %s707_s6, %s707_s6 }
  0x57   :  { %548 = vmatprep.subr.bf16.mxu0 %v746_v47 }
  0x58   :  { %p714_p7 = por %p713_p6, %p712_p5 }
  0x59   :  { %520 = vmatpush3.bf16.msra.mxu1 %v586_v12 }
  0x5a   :  { %521 = vmatprep.subr.bf16.mxu1 %v587_v13  ;;  %549 = vmatpush3.bf16.msra.mxu0 %v597_v49  ;;  %p715_p8 = pnand %p714_p7, %p708_p4 }
  0x5b   :  { %550 = vmatprep.subr.bf16.mxu0 %v746_v47 }
  0x5d   :  { %522 = vmatpush3.bf16.msra.mxu1 %v588_v14 }
  0x5e   :  { %523 = vmatprep.subr.bf16.mxu1 %v589_v15  ;;  %551 = vmatpush3.bf16.msra.mxu0 %v598_v50 }
  0x5f   :  { %552 = vmatprep.subr.bf16.mxu0 %v746_v47 }
  0x61   :  { %524 = vmatpush3.bf16.msra.mxu1 %v590_v16 }
  0x62   :  { %525 = vmatprep.subr.bf16.mxu1 %v591_v17  ;;  %553 = vmatpush3.bf16.msra.mxu0 %v599_v51 }
  0x63   :  { %554 = vmatprep.subr.bf16.mxu0 %v746_v47 }
  0x65   :  { %526 = vmatpush3.bf16.msra.mxu1 %v592_v18 }
  0x66   :  { %527 = vmatprep.subr.bf16.mxu1 %v593_v19  ;;  %555 = vmatpush3.bf16.msra.mxu0 %v600_v52 }
  0x67   :  { %556 = vmatprep.subr.bf16.mxu0 %v746_v47 }
  0x69   :  { %528 = vmatpush3.bf16.msra.mxu1 %v594_v20 }
  0x6a   :  { %557 = vmatpush3.bf16.msra.mxu0 %v601_v53 }
  0x6b   :  { %558 = vmatprep.subr.bf16.mxu0 %v746_v47 }
  0x6e   :  { %559 = vmatpush3.bf16.msra.mxu0 %v602_v54 }
 0x122   :  { %v145_v28 = vpop.f32.mrb[0].mxu0 }
 0x123   :  { %v146_v29 = vadd.f32 %v145_v28, %v90_v26  ;;  %v147_v30 = vpop.f32.mrb[1].mxu0 }
 0x124   :  { %v148_v31 = vadd.f32 %v147_v30, %v94_v27  ;;  %v149_v32 = vpop.f32.mrb[2].mxu0 }
 0x125   :  { %v152_v33 = vsub.f32 0.0, %v146_v29  ;;  %v150_v34 = vpop.f32.mrb[3].mxu0 }
 0x126   :  { %v153_v35 = vsub.f32 0.0, %v148_v31 }
 0x127   :  { %v154_v36 = vmul.f32 1.442695, %v152_v33 }
 0x128   :  { %v156_v37 = vmul.f32 1.442695, %v153_v35 }
 0x129   :  { %603 = vpow2.f32 %v154_v36 }
 0x12a   :  { %605 = vpow2.f32 %v156_v37 }
 0x133   :  { %v604_v38 = vpop.eup %603 }
 0x134   :  { %v606_v39 = vpop.eup %605  ;;  %v158_v40 = vadd.f32 1.0, %v604_v38 }
 0x135   :  { %v159_v41 = vadd.f32 1.0, %v606_v39 }
 0x136   :  { %607 = vrcp.f32 %v158_v40 }
 0x137   :  { %609 = vrcp.f32 %v159_v41 }
 0x140   :  { %v608_v42 = vpop.eup %607 }
 0x141   :  { %v610_v43 = vpop.eup %609  ;;  %v162_v45 = vpack.c.bf16 %v608_v42, %v608_v42 }
 0x142   :  { %v163_v44 = vpack.c.bf16 %v610_v43, %v610_v43 }
 0x144   :  { %331 = vmatprep.mubr.bf16.mxu1 %v163_v44 }
 0x145   :  { %332 = vmatmul.mubr.bf16.vlgmr.msra.gmra.mrb[0].mxu1 %v162_v45 }
 0x218   :  { %v529_v55 = vpop.f32.mrb[0].mxu1 }
 0x219   :  { %v530_v57 = vpop.f32.mrb[1].mxu1 }
 0x21a   :  { %v531_v58 = vadd.f32 %v530_v57, %v529_v55  ;;  %v532_v59 = vpop.f32.mrb[2].mxu1 }
 0x21b   :  { %v533_v60 = vpop.f32.mrb[3].mxu1 }
 0x21c   :  { %v334_v61 = vadd.f32 %v531_v58, %v487_v56 }
 0x21e   :  { %v339_v62 = vsub.f32 0.0, %v334_v61 }
 0x220   :  { %v340_v63 = vmul.f32 1.442695, %v339_v62 }
 0x222   :  { %611 = vpow2.f32 %v340_v63 }
 0x22c   :  { %v612_v0 = vpop.eup %611 }
 0x22d   :  { %v342_v1 = vadd.f32 1.0, %v612_v0 }
 0x22f   :  { %613 = vrcp.f32 %v342_v1 }
 0x239   :  { %v614_v2 = vpop.eup %613 }
 0x23a   :  { %v344_v3 = vpack.c.bf16 %v614_v2, %v614_v2 }
 0x23c   :  { %561 = vmatmul.mubr.bf16.vlgmr.msra.gmra.mrb[4].mxu0 %v344_v3 }
 0x30f   :  { %v450_v5 = vpop.f32.mrb[4].mxu0 }
 0x310   :  { %v451_v6 = vadd.f32 %v504_v4, %v450_v5  ;;  %v562_v7 = vpop.f32.mrb[5].mxu0 }
 0x311   :  { %v453_v8 = vpop.f32.mrb[6].mxu0 }
 0x312   :  { %456 = vmax.xlane.f32.xlu0 %v451_v6  ;;  %v563_v9 = vpop.f32.mrb[7].mxu0 }
 0x39f   :  { %v457_v10 = vpop.xlane.xlu0 %456 }
 0x3a0   :  { %v458_v11 = vsub.f32 %v451_v6, %v457_v10 }
 0x3a2   :  { %v459_v12 = vmul.f32 1.442695, %v458_v11 }
 0x3a4   :  { %615 = vpow2.f32 %v459_v12 }
 0x3ae   :  { %v616_v13 = vpop.eup %615 }
 0x3af   :  { %461 = vadd.xlane.f32.xlu0 %v616_v13 }
 0x43c   :  { %v462_v14 = vpop.xlane.xlu0 %461 }
 0x43d   :  { %617 = vrcp.f32 %v462_v14 }
 0x447   :  { %v618_v15 = vpop.eup %617 }
 0x448   :  { %v464_v16 = vmul.f32 %v618_v15, %v616_v13 }
 0x44a   :  { %466 = vst.msk [vmem:[#allocation10] sm:$0xff] %vm465_vm2, %v464_v16 }
 0x44b   :  { %718 = shalt.err (!%p715_p8)
}
 0x44c   :  { %s719_s10 = scalar_lea.hbm %s865_s7, 128 }
 0x44d   :  { %p720_p9 = scmp.ne.s32.totalorder %s865_s7, %s719_s10  ;;  %p723_p10 = scmp.lt.u32.totalorder %s719_s10, %s865_s7 }
 0x44f   :  { %p725_p11 = pnand %p723_p10, %p720_p9 }
 0x451   :  { %728 = shalt.err (!%p725_p11)
}
 0x452   :  { %476 = dma.vmem_to_hbm [thread:$0]  %s474_s30, 128, %s865_s7, [#allocation4]  }
 0x453   :  { %735 = dma.done.wait [#allocation4], 128  }
 0x454   :  { %736 = vsyncadd [#allocation4], 4294967168 }
 0x455   :  { %480 = vsyncpa [#allocation3], 1 }
 0x456   :  { %481 = vsyncpa [#allocation6], 1 }
 0x457   :  { %482 = vsyncpa [#allocation9], 1 }
 0x458   :  { %483 = vsyncpa [#allocation4], 1 }

// kernel: tpu_custom_call.1
= control target key start
LH: loop header
LB: loop body
LE: loop exit
PB: predicated region body
PF: predicated region fallthrough
CT: control target
= control target key end

     0   :  { %12 = vsyncpa [#allocation3], 0  ;;  %s858_s0 = inlined_call_operand.hbm [shape: f32[8,16], index: 0, kind: input, shape index: {}]   ;;  %s859_s1 = inlined_call_operand.hbm [shape: bf16[16,256], index: 1, kind: input, shape index: {}]   ;;  %s860_s2 = inlined_call_operand.vmem [shape: f32[1,256], index: 2, kind: input, shape index: {}]   ;;  %s861_s3 = inlined_call_operand.hbm [shape: bf16[256,128], index: 3, kind: input, shape index: {}]   ;;  %s862_s4 = inlined_call_operand.vmem [shape: f32[1,128], index: 4, kind: input, shape index: {}]   ;;  %s863_s5 = inlined_call_operand.hbm [shape: bf16[128,128], index: 5, kind: input, shape index: {}]   ;;  %s864_s6 = inlined_call_operand.vmem [shape: f32[1,128], index: 6, kind: input, shape index: {}]   ;;  %s865_s7 = inlined_call_operand.hbm [shape: f32[8,8], index: 7, kind: output, shape index: {}]  }
   0x1   :  { %13 = vsyncpa [#allocation6], 0 }
   0x2   :  { %14 = vsyncpa [#allocation9], 0 }
   0x3   :  { %15 = vsyncpa [#allocation4], 0  ;;  %s737_s24 = smov [#allocation5]   ;;  %s619_s28 = scalar_lea.hbm %s859_s1, 256 }
   0x4   :  { %s31_s25 = sshll.u32 %s737_s24, 4  ;;  %p620_p0 = scmp.ne.s32.totalorder %s859_s1, %s619_s28  ;;  %s32_s25 = int_to_ptr.vmem [resolvable:$true] %s31_s25 }
   0x5   :  { %p623_p1 = scmp.lt.u32.totalorder %s619_s28, %s859_s1 }
   0x7   :  { %p625_p2 = pnand %p623_p1, %p620_p0 }
   0x9   :  { %628 = shalt.err (!%p625_p2)
}
   0xa   :  { %s629_s10 = scalar_lea.vmem %s32_s25, 256  ;;  %p634_p4 = scmp.lt.s32.totalorder %s32_s25, %s32_s25 }
   0xb   :  { %p630_p3 = scmp.ne.s32.totalorder %s32_s25, %s629_s10  ;;  %p635_p5 = scmp.lt.s32.totalorder %s629_s10, %s629_s10 }
   0xd   :  { %p636_p6 = por %p635_p5, %p634_p4 }
   0xf   :  { %p637_p7 = pnand %p636_p6, %p630_p3 }
  0x11   :  { %640 = shalt.err (!%p637_p7)
}
  0x12   :  { %s738_s11 = smov 128   ;;  %s739_s12 = smov 8  }
  0x13   :  { %37 = dma.hbm_to_vmem [thread:$0]  %s859_s1, 256, %s32_s25, [#allocation6], %s738_s11, %s738_s11, %s739_s12  }
  0x14   :  { %s740_s15 = smov [#allocation2]   ;;  %s741_s17 = smov [#allocation7]  }
  0x15   :  { %s22_s16 = sshll.u32 %s740_s15, 4  ;;  %s45_s18 = sshll.u32 %s741_s17, 4  ;;  %s23_s16 = int_to_ptr.vmem [resolvable:$true] %s22_s16  ;;  %s46_s18 = int_to_ptr.vmem [resolvable:$true] %s45_s18 }
  0x16   :  { %s641_s21 = scalar_lea.hbm %s858_s0, 128 }
  0x17   :  { %p642_p8 = scmp.ne.s32.totalorder %s858_s0, %s641_s21  ;;  %p645_p9 = scmp.lt.u32.totalorder %s641_s21, %s858_s0 }
  0x19   :  { %p647_p10 = pnand %p645_p9, %p642_p8 }
  0x1b   :  { %650 = shalt.err (!%p647_p10)
}
  0x1c   :  { %s651_s1 = scalar_lea.vmem %s23_s16, 128  ;;  %p656_p12 = scmp.lt.s32.totalorder %s23_s16, %s23_s16 }
  0x1d   :  { %p652_p11 = scmp.ne.s32.totalorder %s23_s16, %s651_s1  ;;  %p657_p13 = scmp.lt.s32.totalorder %s651_s1, %s651_s1 }
  0x1f   :  { %p658_p0 = por %p657_p13, %p656_p12 }
  0x21   :  { %p659_p1 = pnand %p658_p0, %p652_p11 }
  0x23   :  { %662 = shalt.err (!%p659_p1)
}
  0x24   :  { %25 = dma.hbm_to_vmem [thread:$0]  %s858_s0, 128, %s23_s16, [#allocation3]  }
  0x25   :  { %s663_s30 = scalar_lea.hbm %s861_s3, 2048 }
  0x26   :  { %p664_p2 = scmp.ne.s32.totalorder %s861_s3, %s663_s30  ;;  %p667_p3 = scmp.lt.u32.totalorder %s663_s30, %s861_s3 }
  0x28   :  { %p669_p4 = pnand %p667_p3, %p664_p2 }
  0x2a   :  { %672 = shalt.err (!%p669_p4)
}
  0x2b   :  { %s673_s12 = scalar_lea.vmem %s46_s18, 2048  ;;  %p678_p6 = scmp.lt.s32.totalorder %s46_s18, %s46_s18 }
  0x2c   :  { %p674_p5 = scmp.ne.s32.totalorder %s46_s18, %s673_s12  ;;  %p679_p7 = scmp.lt.s32.totalorder %s673_s12, %s673_s12 }
  0x2e   :  { %p680_p8 = por %p679_p7, %p678_p6 }
  0x30   :  { %p681_p9 = pnand %p680_p8, %p674_p5 }
  0x32   :  { %684 = shalt.err (!%p681_p9)
}
  0x33   :  { %s742_s0 = smov 64   ;;  %s743_s13 = smov 4  }
  0x34   :  { %51 = dma.hbm_to_vmem [thread:$0]  %s861_s3, 2048, %s46_s18, [#allocation6], %s742_s0, %s742_s0, %s743_s13  }
  0x35   :  { %s744_s16 = smov [#allocation8]   ;;  %s685_s21 = scalar_lea.hbm %s863_s5, 1024 }
  0x36   :  { %s59_s17 = sshll.u32 %s744_s16, 4  ;;  %p686_p10 = scmp.ne.s32.totalorder %s863_s5, %s685_s21  ;;  %s60_s17 = int_to_ptr.vmem [resolvable:$true] %s59_s17 }
  0x37   :  { %p689_p11 = scmp.lt.u32.totalorder %s685_s21, %s863_s5 }
  0x39   :  { %p691_p12 = pnand %p689_p11, %p686_p10 }
  0x3b   :  { %694 = shalt.err (!%p691_p12)
}
  0x3c   :  { %s695_s1 = scalar_lea.vmem %s60_s17, 1024  ;;  %p700_p0 = scmp.lt.s32.totalorder %s60_s17, %s60_s17 }
  0x3d   :  { %p696_p13 = scmp.ne.s32.totalorder %s60_s17, %s695_s1  ;;  %p701_p1 = scmp.lt.s32.totalorder %s695_s1, %s695_s1 }
  0x3f   :  { %p702_p2 = por %p701_p1, %p700_p0 }
  0x41   :  { %p703_p3 = pnand %p702_p2, %p696_p13 }
  0x43   :  { %706 = shalt.err (!%p703_p3)
}
  0x44   :  { %65 = dma.hbm_to_vmem [thread:$0]  %s863_s5, 1024, %s60_s17, [#allocation9], %s742_s0, %s742_s0, %s743_s13  }
  0x45   :  { %729 = dma.done.wait [#allocation3], 128  }
  0x46   :  { %730 = vsyncadd [#allocation3], 4294967168 }
  0x47   :  { %731 = dma.done.wait [#allocation6], 2304  }
  0x48   :  { %732 = vsyncadd [#allocation6], 4294964992 }
  0x49   :  { %733 = dma.done.wait [#allocation9], 1024  }
  0x4a   :  { %734 = vsyncadd [#allocation9], 4294966272  ;;  %v745_v0 = vmov 0   ;;  %v576_v1 = vld [vmem:[#allocation5 + $0x4] ss:$8 sps:$4 sm:$0xff]   ;;  %v81_v3 = vld [vmem:[#allocation2] sm:$0xff]  ;;  %v87_v21 = vlaneseq }
  0x4b   :  { %143 = vmatprep.mubr.bf16.mxu0 %v745_v0  ;;  %v578_v2 = vld [vmem:[#allocation5] ss:$8 sps:$4 sm:$0xff]   ;;  %vm107_vm0 = vcmask 130048   ;;  %111 = vmatprep.subr.bf16.mxu0 %v576_v1  ;;  %v82_v4 = vpack.c.bf16 %v81_v3, %v81_v3  ;;  %v579_v5 = vld [vmem:[#allocation7 + $0x40] sm:$0xff]   ;;  %v581_v7 = vld [vmem:[#allocation7 + $0x48] sm:$0xff]   ;;  %v746_v47 = vmov 0.0  }
  0x4c   :  { %112 = vmatpush1.bf16.msra.mxu0 %v578_v2  ;;  %v580_v6 = vld [vmem:[#allocation7] sm:$0xff]   ;;  %513 = vmatprep.subr.bf16.mxu1 %v579_v5  ;;  %v582_v8 = vld [vmem:[#allocation7 + $0x8] sm:$0xff]   ;;  %v583_v9 = vld [vmem:[#allocation7 + $0x50] sm:$0xff]   ;;  %v88_v22 = vshrl.u32 %v87_v21, 7  ;;  %vm747_vm1 = vmmov 0   ;;  %vm465_vm2 = vcmask 64512  }
  0x4d   :  { %514 = vmatpush3.bf16.msra.mxu1 %v580_v6  ;;  %v584_v10 = vld [vmem:[#allocation7 + $0x10] sm:$0xff]   ;;  %v585_v11 = vld [vmem:[#allocation7 + $0x58] sm:$0xff]   ;;  %v587_v13 = vld [vmem:[#allocation7 + $0x60] sm:$0xff]   ;;  %544 = vmatprep.subr.bf16.mxu0 %v746_v47 }
  0x4e   :  { %515 = vmatprep.subr.bf16.mxu1 %v581_v7  ;;  %v586_v12 = vld [vmem:[#allocation7 + $0x18] sm:$0xff]   ;;  %v588_v14 = vld [vmem:[#allocation7 + $0x20] sm:$0xff]   ;;  %v589_v15 = vld [vmem:[#allocation7 + $0x68] sm:$0xff]   ;;  %v89_v23 = vsub.s32 0, %v88_v22  ;;  %v93_v25 = vsub.s32 1, %v88_v22 }
  0x4f   :  { %486 = vmatmul.mubr.msk.bf16.vlgmr.msra.gmra.mrb[0].mxu0 %vm107_vm0, %v82_v4  ;;  %v590_v16 = vld [vmem:[#allocation7 + $0x28] sm:$0xff]   ;;  %v591_v17 = vld [vmem:[#allocation7 + $0x70] sm:$0xff]   ;;  %v593_v19 = vld [vmem:[#allocation7 + $0x78] sm:$0xff]  }
  0x50   :  { %v592_v18 = vld [vmem:[#allocation7 + $0x30] sm:$0xff]   ;;  %v594_v20 = vld [vmem:[#allocation7 + $0x38] sm:$0xff]   ;;  %v85_v24 = vld [vmem:[%s860_s2] sm:$0x3]  ;;  %560 = vmatprep.mubr.msk.bf16.mxu0 %vm747_vm1, %v746_v47 }
  0x51   :  { %516 = vmatpush3.bf16.msra.mxu1 %v582_v8  ;;  %v90_v26 = vrot.slane %v85_v24, %v89_v23  ;;  %v94_v27 = vrot.slane %v85_v24, %v93_v25  ;;  %v595_v46 = vld [vmem:[#allocation8] sm:$0xff]   ;;  %v596_v48 = vld [vmem:[#allocation8 + $0x8] sm:$0xff]   ;;  %v597_v49 = vld [vmem:[#allocation8 + $0x10] sm:$0xff]  }
  0x52   :  { %517 = vmatprep.subr.bf16.mxu1 %v583_v9  ;;  %545 = vmatpush3.bf16.msra.mxu0 %v595_v46  ;;  %v598_v50 = vld [vmem:[#allocation8 + $0x18] sm:$0xff]   ;;  %v599_v51 = vld [vmem:[#allocation8 + $0x20] sm:$0xff]   ;;  %v600_v52 = vld [vmem:[#allocation8 + $0x28] sm:$0xff]  }
  0x53   :  { %546 = vmatprep.subr.bf16.mxu0 %v746_v47  ;;  %v601_v53 = vld [vmem:[#allocation8 + $0x30] sm:$0xff]   ;;  %v602_v54 = vld [vmem:[#allocation8 + $0x38] sm:$0xff]   ;;  %v487_v56 = vld [vmem:[%s862_s4] ss:$0 sm:$0xff]  ;;  %s748_s4 = smov [#allocation10]  }
  0x54   :  { %v504_v4 = vld [vmem:[%s864_s6] ss:$0 sm:$0xff]  ;;  %s473_s30 = sshll.u32 %s748_s4, 4  ;;  %s474_s30 = int_to_ptr.vmem [resolvable:$true] %s473_s30 }
  0x55   :  { %518 = vmatpush3.bf16.msra.mxu1 %v584_v10  ;;  %s707_s6 = scalar_lea.vmem %s474_s30, 128  ;;  %p712_p5 = scmp.lt.s32.totalorder %s474_s30, %s474_s30 }
  0x56   :  { %519 = vmatprep.subr.bf16.mxu1 %v585_v11  ;;  %547 = vmatpush3.bf16.msra.mxu0 %v596_v48  ;;  %p708_p4 = scmp.ne.s32.totalorder %s474_s30, %s707_s6  ;;  %p713_p6 = scmp.lt.s32.totalorder %s707_s6, %s707_s6 }
  0x57   :  { %548 = vmatprep.subr.bf16.mxu0 %v746_v47 }
  0x58   :  { %p714_p7 = por %p713_p6, %p712_p5 }
  0x59   :  { %520 = vmatpush3.bf16.msra.mxu1 %v586_v12 }
  0x5a   :  { %521 = vmatprep.subr.bf16.mxu1 %v587_v13  ;;  %549 = vmatpush3.bf16.msra.mxu0 %v597_v49  ;;  %p715_p8 = pnand %p714_p7, %p708_p4 }
  0x5b   :  { %550 = vmatprep.subr.bf16.mxu0 %v746_v47 }
  0x5d   :  { %522 = vmatpush3.bf16.msra.mxu1 %v588_v14 }
  0x5e   :  { %523 = vmatprep.subr.bf16.mxu1 %v589_v15  ;;  %551 = vmatpush3.bf16.msra.mxu0 %v598_v50 }
  0x5f   :  { %552 = vmatprep.subr.bf16.mxu0 %v746_v47 }
  0x61   :  { %524 = vmatpush3.bf16.msra.mxu1 %v590_v16 }
  0x62   :  { %525 = vmatprep.subr.bf16.mxu1 %v591_v17  ;;  %553 = vmatpush3.bf16.msra.mxu0 %v599_v51 }
  0x63   :  { %554 = vmatprep.subr.bf16.mxu0 %v746_v47 }
  0x65   :  { %526 = vmatpush3.bf16.msra.mxu1 %v592_v18 }
  0x66   :  { %527 = vmatprep.subr.bf16.mxu1 %v593_v19  ;;  %555 = vmatpush3.bf16.msra.mxu0 %v600_v52 }
  0x67   :  { %556 = vmatprep.subr.bf16.mxu0 %v746_v47 }
  0x69   :  { %528 = vmatpush3.bf16.msra.mxu1 %v594_v20 }
  0x6a   :  { %557 = vmatpush3.bf16.msra.mxu0 %v601_v53 }
  0x6b   :  { %558 = vmatprep.subr.bf16.mxu0 %v746_v47 }
  0x6e   :  { %559 = vmatpush3.bf16.msra.mxu0 %v602_v54 }
 0x122   :  { %v145_v28 = vpop.f32.mrb[0].mxu0 }
 0x123   :  { %v146_v29 = vadd.f32 %v145_v28, %v90_v26  ;;  %v147_v30 = vpop.f32.mrb[1].mxu0 }
 0x124   :  { %v148_v31 = vadd.f32 %v147_v30, %v94_v27  ;;  %v149_v32 = vpop.f32.mrb[2].mxu0 }
 0x125   :  { %v152_v33 = vsub.f32 0.0, %v146_v29  ;;  %v150_v34 = vpop.f32.mrb[3].mxu0 }
 0x126   :  { %v153_v35 = vsub.f32 0.0, %v148_v31 }
 0x127   :  { %v154_v36 = vmul.f32 1.442695, %v152_v33 }
 0x128   :  { %v156_v37 = vmul.f32 1.442695, %v153_v35 }
 0x129   :  { %603 = vpow2.f32 %v154_v36 }
 0x12a   :  { %605 = vpow2.f32 %v156_v37 }
 0x133   :  { %v604_v38 = vpop.eup %603 }
 0x134   :  { %v606_v39 = vpop.eup %605  ;;  %v158_v40 = vadd.f32 1.0, %v604_v38 }
 0x135   :  { %v159_v41 = vadd.f32 1.0, %v606_v39 }
 0x136   :  { %607 = vrcp.f32 %v158_v40 }
 0x137   :  { %609 = vrcp.f32 %v159_v41 }
 0x140   :  { %v608_v42 = vpop.eup %607 }
 0x141   :  { %v610_v43 = vpop.eup %609  ;;  %v162_v45 = vpack.c.bf16 %v608_v42, %v608_v42 }
 0x142   :  { %v163_v44 = vpack.c.bf16 %v610_v43, %v610_v43 }
 0x144   :  { %331 = vmatprep.mubr.bf16.mxu1 %v163_v44 }
 0x145   :  { %332 = vmatmul.mubr.bf16.vlgmr.msra.gmra.mrb[0].mxu1 %v162_v45 }
 0x218   :  { %v529_v55 = vpop.f32.mrb[0].mxu1 }
 0x219   :  { %v530_v57 = vpop.f32.mrb[1].mxu1 }
 0x21a   :  { %v531_v58 = vadd.f32 %v530_v57, %v529_v55  ;;  %v532_v59 = vpop.f32.mrb[2].mxu1 }
 0x21b   :  { %v533_v60 = vpop.f32.mrb[3].mxu1 }
 0x21c   :  { %v334_v61 = vadd.f32 %v531_v58, %v487_v56 }
 0x21e   :  { %v339_v62 = vsub.f32 0.0, %v334_v61 }
 0x220   :  { %v340_v63 = vmul.f32 1.442695, %v339_v62 }
 0x222   :  { %611 = vpow2.f32 %v340_v63 }
 0x22c   :  { %v612_v0 = vpop.eup %611 }
 0x22d   :  { %v342_v1 = vadd.f32 1.0, %v612_v0 }
 0x22f   :  { %613 = vrcp.f32 %v342_v1 }
 0x239   :  { %v614_v2 = vpop.eup %613 }
 0x23a   :  { %v344_v3 = vpack.c.bf16 %v614_v2, %v614_v2 }
 0x23c   :  { %561 = vmatmul.mubr.bf16.vlgmr.msra.gmra.mrb[4].mxu0 %v344_v3 }
 0x30f   :  { %v450_v5 = vpop.f32.mrb[4].mxu0 }
 0x310   :  { %v451_v6 = vadd.f32 %v504_v4, %v450_v5  ;;  %v562_v7 = vpop.f32.mrb[5].mxu0 }
 0x311   :  { %v453_v8 = vpop.f32.mrb[6].mxu0 }
 0x312   :  { %456 = vmax.xlane.f32.xlu0 %v451_v6  ;;  %v563_v9 = vpop.f32.mrb[7].mxu0 }
 0x39f   :  { %v457_v10 = vpop.xlane.xlu0 %456 }
 0x3a0   :  { %v458_v11 = vsub.f32 %v451_v6, %v457_v10 }
 0x3a2   :  { %v459_v12 = vmul.f32 1.442695, %v458_v11 }
 0x3a4   :  { %615 = vpow2.f32 %v459_v12 }
 0x3ae   :  { %v616_v13 = vpop.eup %615 }
 0x3af   :  { %461 = vadd.xlane.f32.xlu0 %v616_v13 }
 0x43c   :  { %v462_v14 = vpop.xlane.xlu0 %461 }
 0x43d   :  { %617 = vrcp.f32 %v462_v14 }
 0x447   :  { %v618_v15 = vpop.eup %617 }
 0x448   :  { %v464_v16 = vmul.f32 %v618_v15, %v616_v13 }
 0x44a   :  { %466 = vst.msk [vmem:[#allocation10] sm:$0xff] %vm465_vm2, %v464_v16 }
 0x44b   :  { %718 = shalt.err (!%p715_p8)
}
 0x44c   :  { %s719_s10 = scalar_lea.hbm %s865_s7, 128 }
 0x44d   :  { %p720_p9 = scmp.ne.s32.totalorder %s865_s7, %s719_s10  ;;  %p723_p10 = scmp.lt.u32.totalorder %s719_s10, %s865_s7 }
 0x44f   :  { %p725_p11 = pnand %p723_p10, %p720_p9 }
 0x451   :  { %728 = shalt.err (!%p725_p11)
}
 0x452   :  { %476 = dma.vmem_to_hbm [thread:$0]  %s474_s30, 128, %s865_s7, [#allocation4]  }
 0x453   :  { %735 = dma.done.wait [#allocation4], 128  }
 0x454   :  { %736 = vsyncadd [#allocation4], 4294967168 }
 0x455   :  { %480 = vsyncpa [#allocation3], 1 }
 0x456   :  { %481 = vsyncpa [#allocation6], 1 }
 0x457   :  { %482 = vsyncpa [#allocation9], 1 }
 0x458   :  { %483 = vsyncpa [#allocation4], 1 }

</bundles_post_ra>
